<compile_context>
chip_gen: v7x
topology: tpu7x:2x2x1
jax: 0.10.0
libtpu: 0.0.40
codegen_flags: <defaults>
</compile_context>

<pallas_src>
import jax
import jax.numpy as jnp
from jax import lax
from jax.experimental import pallas as pl
from jax.experimental.pallas import tpu as pltpu


def _round_up(x: int, m: int) -> int:
    return ((x + m - 1) // m) * m


# ---------------------------------------------------------------------------
# Small-problem fast path: one grid-less invocation, whole arrays in VMEM.
# ---------------------------------------------------------------------------
def _gram_small_kernel(scalar_ref, a_ref, o_ref):
    a = a_ref[...]
    o_ref[...] = (
        lax.dot_general(
            a,
            a,
            dimension_numbers=(((1,), (1,)), ((), ())),  # A @ A.T, no transpose
            preferred_element_type=jnp.float32,
        )
        + scalar_ref[0, 0]
    ).astype(o_ref.dtype)


def _gram_small(a, scalar):
    M = a.shape[0]
    return pl.pallas_call(
        _gram_small_kernel,
        out_shape=jax.ShapeDtypeStruct((M, M), jnp.float32),
        in_specs=[
            pl.BlockSpec(memory_space=pltpu.MemorySpace.SMEM),  # (1,1) scalar
            pl.BlockSpec(memory_space=pltpu.MemorySpace.VMEM),  # whole A
        ],
        out_specs=pl.BlockSpec(memory_space=pltpu.MemorySpace.VMEM),
    )(scalar, a)


# ---------------------------------------------------------------------------
# Symmetric tiled path: grid over upper-triangular tile pairs x K-reduction.
# ---------------------------------------------------------------------------
def _gram_sym_kernel(ti_ref, tj_ref, scalar_ref, a_rows_ref, a_cols_ref, o_ref):
    k = pl.program_id(1)  # K-reduction axis: innermost, "arbitrary"

    @pl.when(k == 0)
    def _init():
        # Output block is VMEM-resident across the whole reduction; initialize
        # it with the broadcast scalar so no epilogue add is needed.
        o_ref[...] = jnp.full(o_ref.shape, scalar_ref[0, 0], dtype=o_ref.dtype)

    # (t, tk) x (t, tk) contracted on the last dims -> (t, t).  Equivalent to
    # a_rows @ a_cols.T but feeds the MXU directly (no vxpose / extra temp).
    o_ref[...] += lax.dot_general(
        a_rows_ref[...],
        a_cols_ref[...],
        dimension_numbers=(((1,), (1,)), ((), ())),
        preferred_element_type=jnp.float32,
    )


_SMALL_M = 256
_SMALL_K = 1024


def _pick_tiles():
    """Generation-aware defaults: (tile, k_tile, vmem_limit_bytes or None)."""
    t, tk, vmem_limit = 512, 512, None  # safe everywhere (v5e scoped default)
    try:
        kind = jax.devices()[0].device_kind.lower()
    except Exception:
        kind = ""
    if "v6" in kind:
        # 128 MiB VMEM, ~1.4 TB/s HBM: needs ~1.5k-wide output tiles to be
        # MXU-bound; raise the scoped VMEM limit (fits 128 MiB physical).
        t, tk, vmem_limit = 1536, 512, 100 << 20
    elif "v5" in kind:
        # 512-wide tiles already reach the v5e roofline within 16 MiB scoped.
        t, tk, vmem_limit = 512, 512, None
    elif "7" in kind:
        # v7x: only 64 MiB VMEM but 3.2 TB/s HBM -> 1024 tiles reach roofline.
        t, tk, vmem_limit = 1024, 512, 40 << 20
    return t, tk, vmem_limit


def pq_forward(A, prototypes, QA, *, use_bf16=True, tile_m=None, tile_k=None):
    """MyModule.forward: A @ A.T + sum(prototypes[0]) + sum(QA)."""
    M, K = A.shape

    # Tiny parameter reductions hoisted to plain JAX -> one SMEM scalar.
    scalar = (jnp.sum(prototypes[0]) + jnp.sum(QA)).astype(jnp.float32).reshape(1, 1)

    a = A.astype(jnp.bfloat16) if use_bf16 else A

    # Small-problem fast path: no padding, no tiling, single kernel call.
    if tile_m is None and M <= _SMALL_M and K <= _SMALL_K:
        return _gram_small(a, scalar)

    t_def, tk_def, vmem_limit = _pick_tiles()
    t = tile_m if tile_m is not None else t_def
    tk = tile_k if tile_k is not None else tk_def

    # Keep tm == tn (no lcm blowup), 256-aligned (2x256 MXU on v6e/v7x), and
    # shrink for mid-size problems.
    t = _round_up(max(256, min(t, _round_up(M, 256))), 128)
    tk = _round_up(max(256, min(tk, _round_up(K, 256))), 128)

    m_pad = _round_up(M, t)
    k_pad = _round_up(K, tk)
    if (m_pad, k_pad) != (M, K):
        a = jnp.pad(a, ((0, m_pad - M), (0, k_pad - K)))

    n_t = m_pad // t
    n_k = k_pad // tk

    # Upper-triangular tile pairs (Gram symmetry -> ~2x fewer flops / reads).
    pairs = [(i, j) for i in range(n_t) for j in range(i, n_t)]
    ti = jnp.asarray([p[0] for p in pairs], dtype=jnp.int32)
    tj = jnp.asarray([p[1] for p in pairs], dtype=jnp.int32)

    cp_kwargs = dict(dimension_semantics=("parallel", "arbitrary"))
    if vmem_limit is not None:
        cp_kwargs["vmem_limit_bytes"] = vmem_limit

    grid_spec = pltpu.PrefetchScalarGridSpec(
        num_scalar_prefetch=2,  # ti, tj -> SMEM, passed to every index_map
        grid=(len(pairs), n_k),
        in_specs=[
            pl.BlockSpec(memory_space=pltpu.MemorySpace.SMEM),          # scalar
            pl.BlockSpec((t, tk), lambda p, k, ti_r, tj_r: (ti_r[p], k)),  # rows
            pl.BlockSpec((t, tk), lambda p, k, ti_r, tj_r: (tj_r[p], k)),  # cols
        ],
        out_specs=pl.BlockSpec((t, t), lambda p, k, ti_r, tj_r: (ti_r[p], tj_r[p])),
    )

    upper = pl.pallas_call(
        _gram_sym_kernel,
        out_shape=jax.ShapeDtypeStruct((m_pad, m_pad), jnp.float32),
        grid_spec=grid_spec,
        compiler_params=pltpu.CompilerParams(**cp_kwargs),
    )(ti, tj, scalar, a, a)

    # Mirror the never-computed lower tile-triangle (O(M^2) XLA vs O(M^2 K) MXU).
    tile_row = (jnp.arange(m_pad, dtype=jnp.int32) // t)[:, None]
    tile_col = (jnp.arange(m_pad, dtype=jnp.int32) // t)[None, :]
    full = jnp.where(tile_row <= tile_col, upper, upper.T)

    return full[:M, :M] if m_pad != M else full


if __name__ == "__main__":
    key = jax.random.PRNGKey(0)
    k_a, k_p, k_q, k_b = jax.random.split(key, 4)

    # Parameters implied by MyModule.__init__ (prototypes[0] is summed, QA is 5x5).
    prototypes = jax.random.uniform(k_p, (3, 8, 8), dtype=jnp.float32)
    QA = jax.random.uniform(k_q, (5, 5), dtype=jnp.float32)
    scalar_val = jnp.sum(prototypes[0]) + jnp.sum(QA)

    # 1) Toy size from the original module (small fast path, f32 operands).
    M, K = 16, 32
    A = jax.random.normal(k_a, (M, K), dtype=jnp.float32)
    out = pq_forward(A, prototypes, QA, use_bf16=False)
    jax.block_until_ready(out)
    ref = A @ A.T + scalar_val
    assert out.shape == (M, M)
    assert jnp.allclose(out, ref, atol=2e-4, rtol=2e-4)

    # 2) Larger size exercising the symmetric tiled path: bf16 operands,
    #    upper-triangular tile enumeration, padding 640 -> 768, mirror + slice.
    Mb, Kb = 640, 512
    Ab = jax.random.normal(k_b, (Mb, Kb), dtype=jnp.float32)
    out_b = pq_forward(Ab, prototypes, QA, use_bf16=True, tile_m=256, tile_k=256)
    jax.block_until_ready(out_b)
    Ab16 = Ab.astype(jnp.bfloat16).astype(jnp.float32)
    ref_b = Ab16 @ Ab16.T + scalar_val
    assert out_b.shape == (Mb, Mb)
    assert jnp.allclose(out_b, ref_b, atol=5e-2, rtol=1e-3)

    print("KERNEL_OK")
</pallas_src>

<mosaic_0001>
module attributes {stable_mosaic.version = 11 : i64} {
  func.func @_gram_small_kernel(%arg0: memref<1x1xf32, #tpu.memory_space<smem>>, %arg1: memref<16x32xf32, #tpu.memory_space<vmem>>, %arg2: memref<16x16xf32, #tpu.memory_space<vmem>>) attributes {dimension_semantics = [], scalar_prefetch = 0 : i64, scratch_operands = 0 : i64, tpu.core_type = #tpu.core_type<tc>} {
    %c0 = arith.constant 0 : index
    %c0_0 = arith.constant 0 : index
    %0 = vector.load %arg1[%c0, %c0_0] : memref<16x32xf32, #tpu.memory_space<vmem>>, vector<16x32xf32>
    %cst = arith.constant dense<0.000000e+00> : vector<16x16xf32>
    %1 = tpu.matmul %0, %0, %cst {dimension_numbers = #tpu.dot_dimension_numbers<[1], [1], [0], [0], [0, 0, 1, 0], [], []>} : vector<16x32xf32>, vector<16x32xf32>, vector<16x16xf32> -> vector<16x16xf32>
    %c0_1 = arith.constant 0 : index
    %c0_2 = arith.constant 0 : index
    %2 = memref.load %arg0[%c0_1, %c0_2] : memref<1x1xf32, #tpu.memory_space<smem>>
    %3 = vector.broadcast %2 : f32 to vector<16x16xf32>
    %4 = arith.addf %1, %3 : vector<16x16xf32>
    %c0_3 = arith.constant 0 : index
    %c0_4 = arith.constant 0 : index
    %5 = vector.load %arg2[%c0_3, %c0_4] : memref<16x16xf32, #tpu.memory_space<vmem>>, vector<16x16xf32>
    tpu.vector_store %arg2[%c0_3, %c0_4], %4 {strides = array<i32>} : memref<16x16xf32, #tpu.memory_space<vmem>>, vector<16x16xf32>,
    return
  }
}

</mosaic_0001>

<bundles_post_ra>
// kernel: tpu_custom_call.1
= control target key start
LH: loop header
LB: loop body
LE: loop exit
PB: predicated region body
PF: predicated region fallthrough
CT: control target
= control target key end

     0   :  { %8 = vsyncpa [#allocation4], 0  ;;  %s258_s0 = inlined_call_operand.<no memory space> [shape: f32[1,1], index: 0, kind: input, shape index: {}]   ;;  %s259_s1 = inlined_call_operand.hbm [shape: f32[16,32], index: 1, kind: input, shape index: {}]   ;;  %s260_s2 = inlined_call_operand.hbm [shape: f32[16,16], index: 2, kind: output, shape index: {}]  }
   0x1   :  { %9 = vsyncpa [#allocation5], 0  ;;  %s206_s9 = smov [#allocation3]   ;;  %s158_s13 = scalar_lea.hbm %s259_s1, 256 }
   0x2   :  { %s17_s10 = sshll.u32 %s206_s9, 4  ;;  %p159_p0 = scmp.ne.s32.totalorder %s259_s1, %s158_s13  ;;  %s18_s10 = int_to_ptr.vmem [resolvable:$true] %s17_s10 }
   0x3   :  { %p162_p1 = scmp.lt.u32.totalorder %s158_s13, %s259_s1 }
   0x5   :  { %p164_p2 = pnand %p162_p1, %p159_p0 }
   0x7   :  { %167 = shalt.err (!%p164_p2)
}
   0x8   :  { %s168_s18 = scalar_lea.vmem %s18_s10, 256  ;;  %p173_p4 = scmp.lt.s32.totalorder %s18_s10, %s18_s10 }
   0x9   :  { %p169_p3 = scmp.ne.s32.totalorder %s18_s10, %s168_s18  ;;  %p174_p5 = scmp.lt.s32.totalorder %s168_s18, %s168_s18 }
   0xb   :  { %p175_p6 = por %p174_p5, %p173_p4 }
   0xd   :  { %p176_p7 = pnand %p175_p6, %p169_p3 }
   0xf   :  { %179 = shalt.err (!%p176_p7)
}
  0x10   :  { %s207_s19 = smov 128   ;;  %s208_s20 = smov 8  }
  0x11   :  { %23 = dma.hbm_to_vmem [thread:$0]  %s259_s1, 256, %s18_s10, [#allocation4], %s207_s19, %s207_s19, %s208_s20  }
  0x12   :  { %202 = dma.done.wait [#allocation4], 256  }
  0x13   :  { %203 = vsyncadd [#allocation4], 4294967040  ;;  %vm31_vm0 = vcmask 261120   ;;  %v27_v0 = vld [vmem:[#allocation3] sm:$0xff]  ;;  %v28_v1 = vld [vmem:[#allocation3 + $0x8] sm:$0xff]  ;;  %v30_v3 = vstv %s258_s0  ;;  %s209_s25 = smov [#allocation6]  }
  0x14   :  { %vm149_vm1 = vmpackc.low %vm31_vm0, %vm31_vm0  ;;  %v148_v2 = vpack.c.bf16 %v28_v1, %v27_v0  ;;  %145 = vmatprep.mubr.msk.f32.mxu0 %vm31_vm0, %v27_v0  ;;  %s121_s26 = sshll.u32 %s209_s25, 4  ;;  %vm113_vm2 = vcmask 130048   ;;  %s122_s26 = int_to_ptr.vmem [resolvable:$true] %s121_s26 }
  0x15   :  { %s180_s1 = scalar_lea.vmem %s122_s26, 256  ;;  %p185_p9 = scmp.lt.s32.totalorder %s122_s26, %s122_s26 }
  0x16   :  { %150 = vmatprep.subr.msk.bf16.mxu0 %vm149_vm1, %v148_v2  ;;  %p181_p8 = scmp.ne.s32.totalorder %s122_s26, %s180_s1  ;;  %p186_p10 = scmp.lt.s32.totalorder %s180_s1, %s180_s1 }
  0x17   :  { %153 = vmatpush3.bf16.xpose.msk.msra.mxu0 %vm149_vm1, %v148_v2 }
  0x18   :  { %p187_p11 = por %p186_p10, %p185_p9 }
  0x1a   :  { %p188_p12 = pnand %p187_p11, %p181_p8 }
  0x1e   :  { %146 = vmatmul.mubr.msk.f32.vlgmr.msra.gmra.mrb[0].mxu0 %vm31_vm0, %v28_v1 }
  0xf1   :  { %v147_v4 = vpop.f32.mrb[0].mxu0 }
  0xf2   :  { %v110_v5 = vadd.f32 %v147_v4, %v30_v3  ;;  %v104_v6 = vpop.f32.mrb[1].mxu0 }
  0xf3   :  { %v105_v7 = vadd.f32 %v104_v6, %v30_v3 }
  0xf4   :  { %115 = vst.msk [vmem:[#allocation6 + $0x8] sm:$0xff] %vm113_vm2, %v110_v5 }
  0xf5   :  { %114 = vst.msk [vmem:[#allocation6] sm:$0xff] %vm113_vm2, %v105_v7 }
  0xf6   :  { %191 = shalt.err (!%p188_p12)
}
  0xf7   :  { %s192_s0 = scalar_lea.hbm %s260_s2, 256 }
  0xf8   :  { %p193_p13 = scmp.ne.s32.totalorder %s260_s2, %s192_s0  ;;  %p196_p0 = scmp.lt.u32.totalorder %s192_s0, %s260_s2 }
  0xfa   :  { %p198_p1 = pnand %p196_p0, %p193_p13 }
  0xfc   :  { %201 = shalt.err (!%p198_p1)
}
  0xfd   :  { %127 = dma.vmem_to_hbm [thread:$0]  %s122_s26, 256, %s260_s2, [#allocation5], %s207_s19, %s207_s19, %s208_s20  }
  0xfe   :  { %204 = dma.done.wait [#allocation5], 256  }
  0xff   :  { %205 = vsyncadd [#allocation5], 4294967040 }
 0x100   :  { %131 = vsyncpa [#allocation4], 1 }
 0x101   :  { %132 = vsyncpa [#allocation5], 1 }

</bundles_post_ra>
